<compile_context>
chip_gen: v7x
topology: tpu7x:2x2x1
jax: 0.10.0
libtpu: 0.0.40
codegen_flags: <defaults>
</compile_context>

<pallas_src>
import math
import functools

import jax
import jax.numpy as jnp
from jax import lax
from jax.experimental import pallas as pl
from jax.experimental.pallas import tpu as pltpu


# Preferred tile sizes (MXU-native 256-granular; fall back to full dim for small
# toy shapes so the "block == full array dim" rule keeps everything legal).
MM_TM, MM_TN, MM_TK = 256, 256, 512
ATTN_TQ, ATTN_TK = 128, 128
# TODO(synk): re-derive per generation (v7x has 64 MiB VMEM vs 128 MiB on v5e/v6e).
VMEM_LIMIT = 64 * 1024 * 1024


def _tile(dim, pref):
    """Largest power-of-two tile <= pref that divides dim (>=128), else full dim."""
    t = min(pref, dim)
    while t >= 128:
        if dim % t == 0:
            return t
        t //= 2
    return dim  # small / ragged dims: use the full extent (legal block shape).


def _cparams(dims):
    return pltpu.CompilerParams(dimension_semantics=dims,
                                vmem_limit_bytes=VMEM_LIMIT)


# ----------------------- fused RMSNorm + matmul -----------------------

def _norm_matmul_kernel(x_ref, g_ref, w_ref, o_ref, *, eps):
    # y = (rmsnorm(x) * g) @ W^T ;  x:(tm,K) f32, g:(1,K) f32, w:(tn,K) bf16
    x = x_ref[...].astype(jnp.float32)
    inv = lax.rsqrt(jnp.mean(x * x, axis=-1, keepdims=True) + eps)
    xn = (x * inv * g_ref[...]).astype(jnp.bfloat16)
    o_ref[...] = lax.dot_general(
        xn, w_ref[...], (((1,), (1,)), ((), ())),
        preferred_element_type=jnp.float32).astype(o_ref.dtype)


def norm_matmul(x2d, gamma, w, out_dtype, eps=1e-5):
    m, k = x2d.shape
    n = w.shape[0]
    tm, tn = _tile(m, MM_TM), _tile(n, MM_TN)
    return pl.pallas_call(
        functools.partial(_norm_matmul_kernel, eps=eps),
        out_shape=jax.ShapeDtypeStruct((m, n), out_dtype),
        grid=(m // tm, n // tn),
        in_specs=[pl.BlockSpec((tm, k), lambda i, j: (i, 0)),
                  pl.BlockSpec((1, k), lambda i, j: (0, 0)),
                  pl.BlockSpec((tn, k), lambda i, j: (j, 0))],
        out_specs=pl.BlockSpec((tm, tn), lambda i, j: (i, j)),
        compiler_params=_cparams(("parallel", "parallel")),
    )(x2d, gamma.reshape(1, -1), w)


# -------------------- tiled matmul + fused residual add --------------------

def _matmul_residual_kernel(x_ref, w_ref, r_ref, o_ref, acc_ref):
    @pl.when(pl.program_id(2) == 0)
    def _():
        acc_ref[...] = jnp.zeros_like(acc_ref)

    acc_ref[...] += lax.dot_general(
        x_ref[...], w_ref[...], (((1,), (1,)), ((), ())),
        preferred_element_type=jnp.float32)

    @pl.when(pl.program_id(2) == pl.num_programs(2) - 1)
    def _():
        o_ref[...] = (acc_ref[...] + r_ref[...].astype(jnp.float32)
                      ).astype(o_ref.dtype)


def matmul_residual(x2d, w, resid):
    # y = x @ W^T + resid   (K-reduction tiled with a VMEM accumulator)
    m, k = x2d.shape
    n = w.shape[0]
    tm, tn, tk = _tile(m, MM_TM), _tile(n, MM_TN), _tile(k, MM_TK)
    return pl.pallas_call(
        _matmul_residual_kernel,
        out_shape=jax.ShapeDtypeStruct((m, n), jnp.float32),
        grid=(m // tm, n // tn, k // tk),
        in_specs=[pl.BlockSpec((tm, tk), lambda i, j, kk: (i, kk)),
                  pl.BlockSpec((tn, tk), lambda i, j, kk: (j, kk)),
                  pl.BlockSpec((tm, tn), lambda i, j, kk: (i, j))],
        out_specs=pl.BlockSpec((tm, tn), lambda i, j, kk: (i, j)),
        scratch_shapes=[pltpu.VMEM((tm, tn), jnp.float32)],
        compiler_params=_cparams(("parallel", "parallel", "arbitrary")),
    )(x2d, w, resid)


# ------------- fused RMSNorm + W1/W3 projections + SwiGLU gate -------------

def _norm_ffn_gate_kernel(x_ref, g_ref, w1_ref, w3_ref, o_ref, *, eps):
    x = x_ref[...].astype(jnp.float32)
    inv = lax.rsqrt(jnp.mean(x * x, axis=-1, keepdims=True) + eps)
    xn = (x * inv * g_ref[...]).astype(jnp.bfloat16)
    dn = (((1,), (1,)), ((), ()))
    h1 = lax.dot_general(xn, w1_ref[...], dn, preferred_element_type=jnp.float32)
    h3 = lax.dot_general(xn, w3_ref[...], dn, preferred_element_type=jnp.float32)
    # silu(h1) * h3, exp/reciprocal in f32 on EUP (approx recip is off the VALU path)
    silu_h1 = h1 * pl.reciprocal(1.0 + jnp.exp(-h1), approx=True)
    o_ref[...] = (silu_h1 * h3).astype(o_ref.dtype)


def norm_ffn_gate(x2d, gamma, w1, w3, eps=1e-5):
    m, d = x2d.shape
    f = w1.shape[0]
    tm, tf = _tile(m, MM_TM), _tile(f, MM_TN)
    return pl.pallas_call(
        functools.partial(_norm_ffn_gate_kernel, eps=eps),
        out_shape=jax.ShapeDtypeStruct((m, f), jnp.bfloat16),
        grid=(m // tm, f // tf),
        in_specs=[pl.BlockSpec((tm, d), lambda i, j: (i, 0)),
                  pl.BlockSpec((1, d), lambda i, j: (0, 0)),
                  pl.BlockSpec((tf, d), lambda i, j: (j, 0)),
                  pl.BlockSpec((tf, d), lambda i, j: (j, 0))],
        out_specs=pl.BlockSpec((tm, tf), lambda i, j: (i, j)),
        compiler_params=_cparams(("parallel", "parallel")),
    )(x2d, gamma.reshape(1, -1), w1, w3)


# ----------------- flash attention with fused (rotate-half) RoPE -----------------

def _flash_attn_kernel(q_ref, k_ref, v_ref, qcos_ref, qsin_ref, kcos_ref, ksin_ref,
                       o_ref, m_sc, l_sc, acc_sc, *, scale, tq, tk):
    qi = pl.program_id(1)
    ki = pl.program_id(2)

    @pl.when(ki == 0)
    def _():
        m_sc[...] = jnp.full_like(m_sc, -jnp.inf)
        l_sc[...] = jnp.zeros_like(l_sc)
        acc_sc[...] = jnp.zeros_like(acc_sc)

    # Causal block skipping: kv blocks strictly above the diagonal contribute nothing.
    @pl.when(ki * tk < (qi + 1) * tq)
    def _():
        def rope(x, cos, sin):
            # rotate-half form; q/k features are stored de-interleaved so this is
            # numerically equivalent to the interleaved-pair RoPE of the reference.
            xf = x.astype(jnp.float32)
            hd = xf.shape[-1] // 2
            x1 = xf[:, :hd]
            x2 = xf[:, hd:]
            rot_half = jnp.concatenate([-x2, x1], axis=-1)
            return xf * cos + rot_half * sin

        qr = rope(q_ref[0], qcos_ref[...], qsin_ref[...]).astype(jnp.bfloat16)
        kr = rope(k_ref[0], kcos_ref[...], ksin_ref[...]).astype(jnp.bfloat16)

        s = lax.dot_general(qr, kr, (((1,), (1,)), ((), ())),
                            preferred_element_type=jnp.float32) * scale
        row = qi * tq + lax.broadcasted_iota(jnp.int32, s.shape, 0)
        col = ki * tk + lax.broadcasted_iota(jnp.int32, s.shape, 1)
        s = jnp.where(col <= row, s, -jnp.inf)   # causal mask (diag always unmasked)

        m_prev = m_sc[...]
        m_new = jnp.maximum(m_prev, jnp.max(s, axis=-1, keepdims=True))
        alpha = jnp.exp(m_prev - m_new)
        p = jnp.exp(s - m_new)
        l_sc[...] = alpha * l_sc[...] + jnp.sum(p, axis=-1, keepdims=True)
        acc_sc[...] = alpha * acc_sc[...] + lax.dot_general(
            p.astype(jnp.bfloat16), v_ref[0], (((1,), (0,)), ((), ())),
            preferred_element_type=jnp.float32)
        m_sc[...] = m_new

    @pl.when(ki == pl.num_programs(2) - 1)
    def _():
        o_ref[0] = (acc_sc[...] * pl.reciprocal(l_sc[...], approx=True)
                    ).astype(o_ref.dtype)


def flash_attention(q, k, v, cos_t, sin_t):
    bh, s, d_k = q.shape
    scale = 1.0 / math.sqrt(d_k)
    tq, tk = _tile(s, ATTN_TQ), _tile(s, ATTN_TK)
    per_q = pl.BlockSpec((1, tq, d_k), lambda b, qi, ki: (b, qi, 0))
    per_k = pl.BlockSpec((1, tk, d_k), lambda b, qi, ki: (b, ki, 0))
    qrows = pl.BlockSpec((tq, d_k), lambda b, qi, ki: (qi, 0))
    krows = pl.BlockSpec((tk, d_k), lambda b, qi, ki: (ki, 0))
    return pl.pallas_call(
        functools.partial(_flash_attn_kernel, scale=scale, tq=tq, tk=tk),
        out_shape=jax.ShapeDtypeStruct((bh, s, d_k), jnp.bfloat16),
        grid=(bh, s // tq, s // tk),
        in_specs=[per_q, per_k, per_k, qrows, qrows, krows, krows],
        out_specs=per_q,
        scratch_shapes=[pltpu.VMEM((tq, 1), jnp.float32),
                        pltpu.VMEM((tq, 1), jnp.float32),
                        pltpu.VMEM((tq, d_k), jnp.float32)],
        compiler_params=_cparams(("parallel", "parallel", "arbitrary")),
    )(q, k, v, cos_t, sin_t, cos_t, sin_t)


# ------------------------- parameters / glue -------------------------

def trunc_normal(key, shape, std):
    # matches nn.init.trunc_normal_(mean=0, std=std, a=-3*std, b=3*std)
    return std * jax.random.truncated_normal(key, -3.0, 3.0, shape, dtype=jnp.float32)


def init_params(key, cfg):
    vocab = cfg['vocab_size']
    d_model = cfg['d_model']
    d_ff = cfg['d_ff']
    h = cfg['num_heads']
    d_k = d_model // h
    n_layers = cfg['num_layers']
    keys = jax.random.split(key, 2 + n_layers)

    def lin(k, out_f, in_f):
        std = math.sqrt(2.0 / (in_f + out_f))
        return trunc_normal(k, (out_f, in_f), std)

    # Per-head de-interleave of q/k output features: (x0,x1,x2,...) -> (x0,x2,...,x1,x3,...).
    # Attention scores are invariant under any consistent permutation of q/k features,
    # so module outputs are unchanged; it lets the kernel use rotate-half RoPE (no
    # permutation matmul, no cross-lane pair swap).
    perm = jnp.concatenate([jnp.arange(0, d_k, 2), jnp.arange(1, d_k, 2)])

    def deinterleave_heads(w):   # (h*d_k, d_model)
        return w.reshape(h, d_k, -1)[:, perm, :].reshape(h * d_k, -1)

    params = {'tok_emb': trunc_normal(keys[0], (vocab, d_model), 1.0)}
    layers = []
    for li in range(n_layers):
        lk = jax.random.split(keys[2 + li], 7)
        wq = deinterleave_heads(lin(lk[0], d_model, d_model))
        wk = deinterleave_heads(lin(lk[1], d_model, d_model))
        wv = lin(lk[2], d_model, d_model)
        layers.append({
            'wqkv': jnp.concatenate([wq, wk, wv], axis=0).astype(jnp.bfloat16),
            'wo': lin(lk[3], d_model, d_model).astype(jnp.bfloat16),
            'w1': lin(lk[4], d_ff, d_model).astype(jnp.bfloat16),
            'w2': lin(lk[5], d_model, d_ff).astype(jnp.bfloat16),
            'w3': lin(lk[6], d_ff, d_model).astype(jnp.bfloat16),
            'ln1': jnp.ones((d_model,), jnp.float32),
            'ln2': jnp.ones((d_model,), jnp.float32),
        })
    params['layers'] = layers
    params['ln_f'] = jnp.ones((d_model,), jnp.float32)
    params['lm_head'] = lin(keys[1], vocab, d_model).astype(jnp.bfloat16)
    return params


def rope_tables(theta, d_k, seq_len):
    freqs = 1.0 / (theta ** (jnp.arange(0, d_k, 2, dtype=jnp.float32) / d_k))
    angles = jnp.outer(jnp.arange(seq_len, dtype=jnp.float32), freqs)   # (S, d_k//2)
    cos = jnp.cos(angles)
    sin = jnp.sin(angles)
    # duplicate over the two halves for the rotate-half formulation
    return (jnp.concatenate([cos, cos], axis=1),
            jnp.concatenate([sin, sin], axis=1))


def transformer_forward(params, token_ids, cfg):
    b, s = token_ids.shape
    d_model = cfg['d_model']
    h = cfg['num_heads']
    d_k = d_model // h
    vocab = cfg['vocab_size']
    cos_t, sin_t = rope_tables(cfg['rope_theta'], d_k, s)

    # Embedding lookup: data-dependent row gather kept in plain JAX (glue).
    # TODO(synk): could be a scalar-prefetch + pl.Element row-DMA Pallas kernel.
    x = jnp.take(params['tok_emb'], token_ids, axis=0).reshape(b * s, d_model)

    for layer in params['layers']:
        # ---- attention sublayer: fused rmsnorm + (Q|K|V) projection ----
        qkv = norm_matmul(x, layer['ln1'], layer['wqkv'], jnp.bfloat16)   # (B*S, 3*d_model)
        q, k, v = jnp.split(qkv, 3, axis=1)

        def to_heads(t):
            # TODO(synk): fold the head transpose into the attention BlockSpec
            # index_map instead of a wrapper-side XLA transpose.
            return t.reshape(b, s, h, d_k).transpose(0, 2, 1, 3).reshape(b * h, s, d_k)

        attn = flash_attention(to_heads(q), to_heads(k), to_heads(v), cos_t, sin_t)
        attn = attn.reshape(b, h, s, d_k).transpose(0, 2, 1, 3).reshape(b * s, d_model)
        # output projection with the residual add fused into the matmul epilogue
        x = matmul_residual(attn, layer['wo'], x)

        # ---- SwiGLU sublayer: fused rmsnorm + W1/W3 + gate, then W2 + residual ----
        gated = norm_ffn_gate(x, layer['ln2'], layer['w1'], layer['w3'])  # (B*S, d_ff)
        x = matmul_residual(gated, layer['w2'], x)

    # final rmsnorm fused into the lm_head matmul
    logits = norm_matmul(x, params['ln_f'], params['lm_head'], jnp.float32)
    return logits.reshape(b, s, vocab)


if __name__ == "__main__":
    cfg = dict(vocab_size=64, context_length=16, num_layers=2,
               d_model=32, num_heads=4, d_ff=64, rope_theta=10000.0)
    key = jax.random.PRNGKey(0)
    pkey, dkey = jax.random.split(key)
    params = init_params(pkey, cfg)

    batch, seq = 2, 8
    token_ids = jax.random.randint(dkey, (batch, seq), 0, cfg['vocab_size'],
                                   dtype=jnp.int32)

    logits = transformer_forward(params, token_ids, cfg)
    logits = jax.block_until_ready(logits)
    assert logits.shape == (batch, seq, cfg['vocab_size'])
    assert bool(jnp.all(jnp.isfinite(logits)))
    print("KERNEL_OK")
</pallas_src>

<mosaic_0001>
module attributes {stable_mosaic.version = 11 : i64} {
  func.func @_norm_matmul_kernel(%arg0: i32, %arg1: i32, %arg2: memref<16x32xf32, #tpu.memory_space<vmem>>, %arg3: memref<1x32xf32, #tpu.memory_space<vmem>>, %arg4: memref<96x32xbf16, #tpu.memory_space<vmem>>, %arg5: memref<16x96xbf16, #tpu.memory_space<vmem>>) attributes {dimension_semantics = [#tpu.dimension_semantics<parallel>, #tpu.dimension_semantics<parallel>], iteration_bounds = array<i64: 1, 1>, scalar_prefetch = 0 : i64, scratch_operands = 0 : i64, tpu.core_type = #tpu.core_type<tc>, window_params = [{transform_indices = @transform_0, window_bounds = array<i64: 16, 32>}, {pipeline_mode = #tpu.pipeline_mode<synchronous>, transform_indices = @transform_1, window_bounds = array<i64: 1, 32>}, {transform_indices = @transform_2, window_bounds = array<i64: 96, 32>}, {transform_indices = @transform_3, window_bounds = array<i64: 16, 96>}]} {
    %c0 = arith.constant 0 : index
    %c0_0 = arith.constant 0 : index
    %0 = vector.load %arg2[%c0, %c0_0] : memref<16x32xf32, #tpu.memory_space<vmem>>, vector<16x32xf32>
    %1 = arith.mulf %0, %0 : vector<16x32xf32>
    %cst = arith.constant dense<0.000000e+00> : vector<16xf32>
    %2 = vector.multi_reduction <add>, %1, %cst [1] : vector<16x32xf32> to vector<16xf32>
    %3 = vector.shape_cast %2 : vector<16xf32> to vector<16x1xf32>
    %cst_1 = arith.constant 3.200000e+01 : f32
    %4 = vector.broadcast %cst_1 : f32 to vector<16x1xf32>
    %5 = arith.divf %3, %4 : vector<16x1xf32>
    %cst_2 = arith.constant 9.99999974E-6 : f32
    %6 = vector.broadcast %cst_2 : f32 to vector<16x1xf32>
    %7 = arith.addf %5, %6 : vector<16x1xf32>
    %8 = math.rsqrt %7 : vector<16x1xf32>
    %9 = vector.broadcast %8 : vector<16x1xf32> to vector<16x32xf32>
    %10 = arith.mulf %0, %9 : vector<16x32xf32>
    %c0_3 = arith.constant 0 : index
    %c0_4 = arith.constant 0 : index
    %11 = vector.load %arg3[%c0_3, %c0_4] : memref<1x32xf32, #tpu.memory_space<vmem>>, vector<1x32xf32>
    %12 = vector.broadcast %11 : vector<1x32xf32> to vector<16x32xf32>
    %13 = arith.mulf %10, %12 : vector<16x32xf32>
    %14 = arith.truncf %13 : vector<16x32xf32> to vector<16x32xbf16>
    %c0_5 = arith.constant 0 : index
    %c0_6 = arith.constant 0 : index
    %15 = vector.load %arg4[%c0_5, %c0_6] : memref<96x32xbf16, #tpu.memory_space<vmem>>, vector<96x32xbf16>
    %cst_7 = arith.constant dense<0.000000e+00> : vector<16x96xf32>
    %16 = tpu.matmul %14, %15, %cst_7 {dimension_numbers = #tpu.dot_dimension_numbers<[1], [1], [0], [0], [0, 0, 1, 0], [], []>} : vector<16x32xbf16>, vector<96x32xbf16>, vector<16x96xf32> -> vector<16x96xf32>
    %17 = arith.truncf %16 : vector<16x96xf32> to vector<16x96xbf16>
    %c0_8 = arith.constant 0 : index
    %c0_9 = arith.constant 0 : index
    %18 = vector.load %arg5[%c0_8, %c0_9] : memref<16x96xbf16, #tpu.memory_space<vmem>>, vector<16x96xbf16>
    tpu.vector_store %arg5[%c0_8, %c0_9], %17 {strides = array<i32>} : memref<16x96xbf16, #tpu.memory_space<vmem>>, vector<16x96xbf16>,
    return
  }
  func.func @transform_0(%arg0: i32, %arg1: i32) -> (i32, i32) {
    %c0_i32 = arith.constant 0 : i32
    %c0_i32_0 = arith.constant 0 : i32
    return %arg0, %c0_i32 : i32, i32
  }
  func.func @transform_1(%arg0: i32, %arg1: i32) -> (i32, i32) {
    %c0_i32 = arith.constant 0 : i32
    %c0_i32_0 = arith.constant 0 : i32
    %c0_i32_1 = arith.constant 0 : i32
    return %c0_i32, %c0_i32_0 : i32, i32
  }
  func.func @transform_2(%arg0: i32, %arg1: i32) -> (i32, i32) {
    %c0_i32 = arith.constant 0 : i32
    %c0_i32_0 = arith.constant 0 : i32
    return %arg1, %c0_i32 : i32, i32
  }
  func.func @transform_3(%arg0: i32, %arg1: i32) -> (i32, i32) {
    %c0_i32 = arith.constant 0 : i32
    return %arg0, %arg1 : i32, i32
  }
}

</mosaic_0001>

<bundles_post_ra>
// kernel: tpu_custom_call.1
= control target key start
LH: loop header
LB: loop body
LE: loop exit
PB: predicated region body
PF: predicated region fallthrough
CT: control target
= control target key end

     0   :  { %8 = vsyncpa [#allocation3], 0  ;;  %s467_s0 = inlined_call_operand.hbm [shape: f32[16,32], index: 0, kind: input, shape index: {}]   ;;  %s468_s1 = inlined_call_operand.hbm [shape: f32[1,32], index: 1, kind: input, shape index: {}]   ;;  %s469_s2 = inlined_call_operand.hbm [shape: bf16[96,32], index: 2, kind: input, shape index: {}]   ;;  %s470_s3 = inlined_call_operand.hbm [shape: bf16[16,96], index: 3, kind: output, shape index: {}]  }
   0x1   :  { %9 = vsyncpa [#allocation6], 0 }
   0x2   :  { %10 = vsyncpa [#allocation4], 0  ;;  %s367_s12 = smov [#allocation5]   ;;  %s368_s14 = smov [#allocation2]  }
   0x3   :  { %s29_s13 = sshll.u32 %s367_s12, 4  ;;  %s16_s15 = sshll.u32 %s368_s14, 4  ;;  %s30_s13 = int_to_ptr.vmem [resolvable:$true] %s29_s13  ;;  %s397_s15 = int_to_ptr.vmem [resolvable:$true] %s16_s15 }
   0x4   :  { %s273_s18 = scalar_lea.hbm %s468_s1, 16 }
   0x5   :  { %p274_p0 = scmp.ne.s32.totalorder %s468_s1, %s273_s18  ;;  %p277_p1 = scmp.lt.u32.totalorder %s273_s18, %s468_s1 }
   0x7   :  { %p279_p2 = pnand %p277_p1, %p274_p0 }
   0x9   :  { %282 = shalt.err (!%p279_p2)
}
   0xa   :  { %s283_s23 = scalar_lea.vmem %s30_s13, 16  ;;  %s287_s24 = scalar_lea.vmem %s30_s13, 32 }
   0xb   :  { %p284_p3 = scmp.ne.s32.totalorder %s30_s13, %s283_s23  ;;  %p288_p4 = scmp.lt.s32.totalorder %s30_s13, %s30_s13 }
   0xc   :  { %p289_p5 = scmp.lt.s32.totalorder %s287_s24, %s283_s23 }
   0xe   :  { %p290_p6 = por %p289_p5, %p288_p4 }
  0x10   :  { %p291_p7 = pnand %p290_p6, %p284_p3 }
  0x12   :  { %294 = shalt.err (!%p291_p7)
}
  0x13   :  { %32 = dma.hbm_to_vmem [thread:$0]  %s468_s1, 16, %s30_s13, [#allocation6]  }
  0x14   :  { %s295_s29 = scalar_lea.hbm %s467_s0, 256 }
  0x15   :  { %p296_p8 = scmp.ne.s32.totalorder %s467_s0, %s295_s29  ;;  %p299_p9 = scmp.lt.u32.totalorder %s295_s29, %s467_s0 }
  0x17   :  { %p301_p10 = pnand %p299_p9, %p296_p8 }
  0x19   :  { %304 = shalt.err (!%p301_p10)
}
  0x1a   :  { %s305_s7 = scalar_lea.vmem %s397_s15, 256  ;;  %p310_p12 = scmp.lt.s32.totalorder %s397_s15, %s397_s15 }
  0x1b   :  { %p306_p11 = scmp.ne.s32.totalorder %s397_s15, %s305_s7  ;;  %p311_p13 = scmp.lt.s32.totalorder %s305_s7, %s305_s7 }
  0x1d   :  { %p312_p0 = por %p311_p13, %p310_p12 }
  0x1f   :  { %p313_p1 = pnand %p312_p0, %p306_p11 }
  0x21   :  { %316 = shalt.err (!%p313_p1)
}
  0x22   :  { %s369_s1 = smov 128   ;;  %s370_s8 = smov 8  }
  0x23   :  { %22 = dma.hbm_to_vmem [thread:$0]  %s467_s0, 256, %s397_s15, [#allocation3], %s369_s1, %s369_s1, %s370_s8  }
  0x24   :  { %s371_s11 = smov [#allocation7]   ;;  %s317_s16 = scalar_lea.hbm %s469_s2, 768 }
  0x25   :  { %s38_s12 = sshll.u32 %s371_s11, 4  ;;  %p318_p2 = scmp.ne.s32.totalorder %s469_s2, %s317_s16  ;;  %s39_s12 = int_to_ptr.vmem [resolvable:$true] %s38_s12 }
  0x26   :  { %p321_p3 = scmp.lt.u32.totalorder %s317_s16, %s469_s2 }
  0x28   :  { %p323_p4 = pnand %p321_p3, %p318_p2 }
  0x2a   :  { %326 = shalt.err (!%p323_p4)
}
  0x2b   :  { %s327_s21 = scalar_lea.vmem %s39_s12, 768  ;;  %p332_p6 = scmp.lt.s32.totalorder %s39_s12, %s39_s12 }
  0x2c   :  { %p328_p5 = scmp.ne.s32.totalorder %s39_s12, %s327_s21  ;;  %p333_p7 = scmp.lt.s32.totalorder %s327_s21, %s327_s21 }
  0x2e   :  { %p334_p8 = por %p333_p7, %p332_p6 }
  0x30   :  { %p335_p9 = pnand %p334_p8, %p328_p5 }
  0x32   :  { %338 = shalt.err (!%p335_p9)
}
  0x33   :  { %s372_s0 = smov 64   ;;  %s373_s15 = smov 4  }
  0x34   :  { %44 = dma.hbm_to_vmem [thread:$0]  %s469_s2, 768, %s39_s12, [#allocation6], %s372_s0, %s372_s0, %s373_s15  }
  0x35   :  { %361 = dma.done.wait [#allocation3], 256  }
  0x36   :  { %362 = vsyncadd [#allocation3], 4294967040 }
  0x37   :  { %363 = dma.done.wait [#allocation6], 784  }
  0x38   :  { %364 = vsyncadd [#allocation6], 4294966512  ;;  %v374_v0 = vmov 0.0   ;;  %v55_v1 = vld [vmem:[#allocation2] sm:$0xff]  ;;  %vm59_vm0 = vcmask 261120   ;;  %v56_v2 = vld [vmem:[#allocation2 + $0x8] sm:$0xff] }
  0x39   :  { %237 = vmatprep.subr.bf16.mxu0 %v374_v0  ;;  %v57_v3 = vmul.f32 %v55_v1, %v55_v1  ;;  %v58_v4 = vmul.f32 %v56_v2, %v56_v2  ;;  %v263_v5 = vld [vmem:[#allocation7] sm:$0xff]   ;;  %v264_v9 = vld [vmem:[#allocation7 + $0x8] sm:$0xff]   ;;  %v265_v11 = vld [vmem:[#allocation7 + $0x10] sm:$0xff]   ;;  %vm375_vm1 = vmmov 0   ;;  %vm197_vm2 = vcmask 781312   ;;  %s376_s2 = smov [#allocation8]  }
  0x3a   :  { %v131_v7 = vsel %vm59_vm0, %v263_v5, 0  ;;  %v134_v10 = vsel %vm59_vm0, %v264_v9, 0  ;;  %v137_v12 = vsel %vm59_vm0, %v265_v11, 0  ;;  %v266_v13 = vld [vmem:[#allocation7 + $0x18] sm:$0xff]   ;;  %249 = vmatprep.mubr.msk.bf16.mxu0 %vm375_vm1, %v374_v0  ;;  %v267_v15 = vld [vmem:[#allocation7 + $0x20] sm:$0xff]   ;;  %v268_v17 = vld [vmem:[#allocation7 + $0x28] sm:$0xff]  }
  0x3b   :  { %v60_v6 = vsel %vm59_vm0, %v57_v3, 0.0  ;;  %238 = vmatpush3.bf16.xpose.msra.mxu0 %v131_v7  ;;  %v63_v8 = vsel %vm59_vm0, %v58_v4, 0.0  ;;  %v140_v14 = vsel %vm59_vm0, %v266_v13, 0  ;;  %v143_v16 = vsel %vm59_vm0, %v267_v15, 0  ;;  %v218_v28 = vld [vmem:[#allocation5] ss:$0 sm:$0xff] }
  0x3c   :  { %61 = vadd.xlane.f32.xlu0 %v60_v6  ;;  %239 = vmatprep.subr.bf16.mxu0 %v374_v0  ;;  %v146_v18 = vsel %vm59_vm0, %v268_v17, 0  ;;  %s205_s24 = sshll.u32 %s376_s2, 4  ;;  %s206_s24 = int_to_ptr.vmem [resolvable:$true] %s205_s24 }
  0x3d   :  { %s339_s25 = scalar_lea.vmem %s206_s24, 128  ;;  %p344_p11 = scmp.lt.s32.totalorder %s206_s24, %s206_s24 }
  0x3e   :  { %p340_p10 = scmp.ne.s32.totalorder %s206_s24, %s339_s25  ;;  %p345_p12 = scmp.lt.s32.totalorder %s339_s25, %s339_s25 }
  0x40   :  { %64 = vadd.xlane.f32.xlu0 %v63_v8  ;;  %p346_p13 = por %p345_p12, %p344_p11 }
  0x42   :  { %p347_p0 = pnand %p346_p13, %p340_p10 }
  0x43   :  { %240 = vmatpush3.bf16.xpose.msra.mxu0 %v134_v10 }
  0x44   :  { %241 = vmatprep.subr.bf16.mxu0 %v374_v0 }
  0x4b   :  { %242 = vmatpush3.bf16.xpose.msra.mxu0 %v137_v12 }
  0x4c   :  { %243 = vmatprep.subr.bf16.mxu0 %v374_v0 }
  0x53   :  { %244 = vmatpush3.bf16.xpose.msra.mxu0 %v140_v14 }
  0x54   :  { %245 = vmatprep.subr.bf16.mxu0 %v374_v0 }
  0x5b   :  { %246 = vmatpush3.bf16.xpose.msra.mxu0 %v143_v16 }
  0x5c   :  { %247 = vmatprep.subr.bf16.mxu0 %v374_v0 }
  0x63   :  { %248 = vmatpush3.bf16.xpose.msra.mxu0 %v146_v18 }
  0xc9   :  { %v62_v19 = vpop.xlane.xlu0 %61 }
  0xca   :  { %v67_v20 = vmul.f32 0.03125, %v62_v19 }
  0xcc   :  { %v69_v21 = vadd.f32 1e-05, %v67_v20 }
  0xcd   :  { %v65_v22 = vpop.xlane.xlu0 %64 }
  0xce   :  { %269 = vrsqrt.f32 %v69_v21  ;;  %v68_v23 = vmul.f32 0.03125, %v65_v22 }
  0xd0   :  { %v70_v24 = vadd.f32 1e-05, %v68_v23 }
  0xd2   :  { %271 = vrsqrt.f32 %v70_v24 }
  0xd8   :  { %v270_v25 = vpop.eup %269 }
  0xd9   :  { %v73_v26 = vmul.f32 %v270_v25, %v55_v1 }
  0xdb   :  { %v82_v30 = vmul.f32 %v218_v28, %v73_v26 }
  0xdc   :  { %v272_v27 = vpop.eup %271 }
  0xdd   :  { %v74_v29 = vmul.f32 %v272_v27, %v56_v2 }
  0xdf   :  { %v83_v31 = vmul.f32 %v218_v28, %v74_v29 }
  0xe1   :  { %v84_v32 = vpack.c.bf16 %v83_v31, %v82_v30 }
  0xe3   :  { %250 = vmatmul.mubr.msk.bf16.vlgmr.msra.gmra.mrb[0].mxu0 %vm59_vm0, %v84_v32 }
 0x1b6   :  { %v182_v33 = vpop.f32.mrb[0].mxu0 }
 0x1b7   :  { %v228_v34 = vpack.c.bf16 %v182_v33, %v182_v33  ;;  %v251_v35 = vpop.f32.mrb[1].mxu0 }
 0x1b8   :  { %v185_v36 = vpop.f32.mrb[2].mxu0 }
 0x1b9   :  { %v229_v37 = vpack.c.bf16 %v185_v36, %v185_v36  ;;  %v252_v38 = vpop.f32.mrb[3].mxu0  ;;  %198 = vst.msk [vmem:[#allocation8] sm:$0xf] %vm197_vm2, %v228_v34 }
 0x1bb   :  { %199 = vst.msk [vmem:[#allocation8 + $0x4] sm:$0xf] %vm197_vm2, %v229_v37 }
 0x1bc   :  { %350 = shalt.err (!%p347_p0)
}
 0x1bd   :  { %s351_s28 = scalar_lea.hbm %s470_s3, 128 }
 0x1be   :  { %p352_p1 = scmp.ne.s32.totalorder %s470_s3, %s351_s28  ;;  %p355_p2 = scmp.lt.u32.totalorder %s351_s28, %s470_s3 }
 0x1c0   :  { %p357_p3 = pnand %p355_p2, %p352_p1 }
 0x1c2   :  { %360 = shalt.err (!%p357_p3)
}
 0x1c3   :  { %211 = dma.vmem_to_hbm [thread:$0]  %s206_s24, 128, %s470_s3, [#allocation4], %s372_s0, %s372_s0, %s373_s15  }
 0x1c4   :  { %365 = dma.done.wait [#allocation4], 128  }
 0x1c5   :  { %366 = vsyncadd [#allocation4], 4294967168 }
 0x1c6   :  { %215 = vsyncpa [#allocation3], 1 }
 0x1c7   :  { %216 = vsyncpa [#allocation6], 1 }
 0x1c8   :  { %217 = vsyncpa [#allocation4], 1 }

</bundles_post_ra>
